<compile_context>
chip_gen: v6e
topology: v6e:2x2x1
jax: 0.10.0
libtpu: 0.0.40
codegen_flags: <defaults>
</compile_context>

<pallas_src>
import jax
import jax.numpy as jnp
from jax.experimental import pallas as pl
from jax.experimental.pallas import tpu as pltpu


def _abs_kernel(x_ref, o_ref):
    # Elementwise |x| on the current VMEM tile (VPU op).
    o_ref[...] = jnp.abs(x_ref[...])


_LANE_CANDIDATES = (2048, 1024, 512, 256, 128)   # lane-dense last-dim choices
_TARGET_BLOCK_BYTES = 2 * 1024 * 1024            # ~2 MiB per block


def abs_pallas(x: jax.Array) -> jax.Array:
    """Elementwise abs via a tiled Pallas TPU kernel.

    Supports real floating / integer dtypes (complex excluded: jnp.abs would
    change the dtype).
    """
    orig_shape = x.shape
    dtype = x.dtype
    total = x.size
    if total == 0:
        return x

    itemsize = jnp.dtype(dtype).itemsize
    # Packed-sublane granularity: 8 rows (f32), 16 (bf16), 32 (int8/fp8).
    sublane = max(8, 32 // max(itemsize, 1))

    # Flatten (free) and pick a lane-dense column count that divides the total
    # exactly so no pad/slice copies are needed.  Prefer a choice that also
    # gives >= one full sublane group of rows.
    x_flat = jnp.reshape(x, (-1,))
    cols = None
    for c in _LANE_CANDIDATES:
        if total % c == 0 and total // c >= sublane:
            cols = c
            break
    if cols is None:
        for c in _LANE_CANDIDATES:
            if total % c == 0:
                cols = c
                break

    padded_total = total
    if cols is None:
        # Rare fallback (total not a multiple of 128): minimal pad of the flat
        # view.  This costs an extra copy, so it is only taken when unavoidable.
        cols = 128
        padded_total = pl.cdiv(total, cols) * cols
        x_flat = jnp.pad(x_flat, (0, padded_total - total))

    rows = padded_total // cols
    x2d = jnp.reshape(x_flat, (rows, cols))

    # Block sizing: ~_TARGET_BLOCK_BYTES per block, row count a multiple of the
    # packed-sublane granularity (or the full row extent for small inputs).
    want_rows = max(1, _TARGET_BLOCK_BYTES // (cols * itemsize))
    tile_rows = max(sublane, (want_rows // sublane) * sublane)
    tile_rows = min(tile_rows, rows)
    grid_rows = pl.cdiv(rows, tile_rows)   # last block may be partial; Pallas
                                           # clips the DMA / masks the store.

    out2d = pl.pallas_call(
        _abs_kernel,
        out_shape=jax.ShapeDtypeStruct((rows, cols), dtype),
        grid_spec=pltpu.PrefetchScalarGridSpec(
            num_scalar_prefetch=0,
            grid=(grid_rows,),
            in_specs=[pl.BlockSpec((tile_rows, cols), lambda i: (i, 0))],
            out_specs=pl.BlockSpec((tile_rows, cols), lambda i: (i, 0)),
        ),
        compiler_params=pltpu.CompilerParams(
            dimension_semantics=("parallel",),
        ),
    )(x2d)

    out_flat = jnp.reshape(out2d, (-1,))
    if padded_total != total:
        out_flat = out_flat[:total]
    return jnp.reshape(out_flat, orig_shape)


if __name__ == "__main__":
    key = jax.random.PRNGKey(0)

    # Small NCHW input consistent with a conv-style module: batch=2, C=4, H=W=16.
    # total = 2048 elements -> single block, no padding, no grid overhead.
    x = jax.random.normal(key, (2, 4, 16, 16), dtype=jnp.float32)
    y = abs_pallas(x)
    jax.block_until_ready(y)
    assert y.shape == x.shape and y.dtype == x.dtype
    assert bool(jnp.allclose(y, jnp.abs(x))), "mismatch vs jnp.abs (small input)"

    # Larger input to exercise the tiled multi-block path (8 MiB f32):
    # cols=2048, rows=1024, tile_rows=256 -> grid of 4 lane-dense 2 MiB blocks.
    x_big = jax.random.normal(key, (4, 32, 128, 128), dtype=jnp.float32)
    y_big = abs_pallas(x_big)
    jax.block_until_ready(y_big)
    assert y_big.shape == x_big.shape and y_big.dtype == x_big.dtype
    assert bool(jnp.allclose(y_big, jnp.abs(x_big))), "mismatch vs jnp.abs (tiled input)"

    print("KERNEL_OK")
</pallas_src>

<mosaic_0001>
module attributes {stable_mosaic.version = 11 : i64} {
  func.func @_abs_kernel(%arg0: i32, %arg1: memref<8x256xf32, #tpu.memory_space<vmem>>, %arg2: memref<8x256xf32, #tpu.memory_space<vmem>>) attributes {dimension_semantics = [#tpu.dimension_semantics<parallel>], iteration_bounds = array<i64: 1>, scalar_prefetch = 0 : i64, scratch_operands = 0 : i64, tpu.core_type = #tpu.core_type<tc>, window_params = [{transform_indices = @transform_0, window_bounds = array<i64: 8, 256>}, {transform_indices = @transform_1, window_bounds = array<i64: 8, 256>}]} {
    %c0 = arith.constant 0 : index
    %c0_0 = arith.constant 0 : index
    %0 = vector.load %arg1[%c0, %c0_0] : memref<8x256xf32, #tpu.memory_space<vmem>>, vector<8x256xf32>
    %1 = math.absf %0 : vector<8x256xf32>
    %c0_1 = arith.constant 0 : index
    %c0_2 = arith.constant 0 : index
    %2 = vector.load %arg2[%c0_1, %c0_2] : memref<8x256xf32, #tpu.memory_space<vmem>>, vector<8x256xf32>
    tpu.vector_store %arg2[%c0_1, %c0_2], %1 {strides = array<i32>} : memref<8x256xf32, #tpu.memory_space<vmem>>, vector<8x256xf32>,
    return
  }
  func.func @transform_0(%arg0: i32) -> (i32, i32) {
    %c0_i32 = arith.constant 0 : i32
    %c0_i32_0 = arith.constant 0 : i32
    return %arg0, %c0_i32 : i32, i32
  }
  func.func @transform_1(%arg0: i32) -> (i32, i32) {
    %c0_i32 = arith.constant 0 : i32
    %c0_i32_0 = arith.constant 0 : i32
    return %arg0, %c0_i32 : i32, i32
  }
}

</mosaic_0001>

<bundles_post_ra>
// kernel: tpu_custom_call.1
= control target key start
LH: loop header
LB: loop body
LE: loop exit
PB: predicated region body
PF: predicated region fallthrough
CT: control target
= control target key end

     0   :  { %6 = vsyncpa [#allocation3], 0  ;;  %s106_s0 = inlined_call_operand.hbm [shape: f32[8,256], index: 0, kind: input, shape index: {}]   ;;  %s107_s1 = inlined_call_operand.hbm [shape: f32[8,256], index: 1, kind: output, shape index: {}]  }
   0x1   :  { %7 = vsyncpa [#allocation4], 0  ;;  %s88_s6 = smov [#allocation2]  }
   0x2   :  { %s14_s7 = sshll.u32 %s88_s6, 4  ;;  %s15_s7 = int_to_ptr.vmem [resolvable:$true] %s14_s7 }
   0x3   :  { %s52_s8 = scalar_lea.vmem %s15_s7, 256  ;;  %p57_p1 = scmp.lt.s32.totalorder %s15_s7, %s15_s7 }
   0x4   :  { %p53_p0 = scmp.ne.s32.totalorder %s15_s7, %s52_s8  ;;  %p58_p2 = scmp.lt.s32.totalorder %s52_s8, %s52_s8 }
   0x6   :  { %p59_p3 = por %p58_p2, %p57_p1 }
   0x8   :  { %p60_p4 = pnand %p59_p3, %p53_p0 }
   0xa   :  { %63 = shalt.err (!%p60_p4)
}
   0xb   :  { %17 = dma.hbm_to_vmem [thread:$0]  %s106_s0, 256, %s15_s7, [#allocation3]  }
   0xc   :  { %84 = dma.done.wait [#allocation3], 256  }
   0xd   :  { %85 = vsyncadd [#allocation3], 4294967040  ;;  %s89_s11 = smov [#allocation5]   ;;  %v21_v0 = vld [vmem:[#allocation2] sm:$0xff]  ;;  %v22_v1 = vld [vmem:[#allocation2 + $0x8] sm:$0xff] }
   0xe   :  { %s33_s12 = sshll.u32 %s89_s11, 4  ;;  %v23_v2 = vand.u32 2147483647, %v21_v0  ;;  %v24_v3 = vand.u32 2147483647, %v22_v1  ;;  %s34_s12 = int_to_ptr.vmem [resolvable:$true] %s33_s12 }
   0xf   :  { %s64_s13 = scalar_lea.vmem %s34_s12, 256  ;;  %p69_p6 = scmp.lt.s32.totalorder %s34_s12, %s34_s12 }
  0x10   :  { %25 = vst [vmem:[#allocation5] sm:$0xff] %v23_v2  ;;  %26 = vst [vmem:[#allocation5 + $0x8] sm:$0xff] %v24_v3  ;;  %p65_p5 = scmp.ne.s32.totalorder %s34_s12, %s64_s13  ;;  %p70_p7 = scmp.lt.s32.totalorder %s64_s13, %s64_s13 }
  0x12   :  { %p71_p8 = por %p70_p7, %p69_p6 }
  0x14   :  { %p72_p9 = pnand %p71_p8, %p65_p5 }
  0x16   :  { %75 = shalt.err (!%p72_p9)
}
  0x17   :  { %36 = dma.vmem_to_hbm [thread:$0]  %s34_s12, 256, %s107_s1, [#allocation4]  }
  0x18   :  { %86 = dma.done.wait [#allocation4], 256  }
  0x19   :  { %87 = vsyncadd [#allocation4], 4294967040 }
  0x1a   :  { %40 = vsyncpa [#allocation3], 1 }
  0x1b   :  { %41 = vsyncpa [#allocation4], 1 }

</bundles_post_ra>
